<compile_context>
chip_gen: v7x
topology: tpu7x:2x2x1
jax: 0.10.0
libtpu: 0.0.40
codegen_flags: <defaults>
</compile_context>

<pallas_src>
import functools

import jax
import jax.numpy as jnp
from jax.experimental import pallas as pl
from jax.experimental.pallas import tpu as pltpu


HIDDEN = 64


def _round_up(x, m):
    return ((x + m - 1) // m) * m


def mlp_kernel(obs_ref, w1_ref, b1_ref, w2_ref, b2_ref, w3_ref, b3_ref, out_ref):
    # obs arrives in f32 (read once from HBM); cast to the MXU compute dtype
    # in-kernel -- free VPU work under a memory-bound regime.
    x = obs_ref[...].astype(w1_ref.dtype)

    # layer1 + ReLU  (f32 accumulate; bias add / ReLU in f32)
    h1 = jnp.dot(x, w1_ref[...], preferred_element_type=jnp.float32) + b1_ref[...]
    h1 = jnp.maximum(h1, 0.0)

    # layer2 + ReLU  (single convert to feed the bf16 MXU path)
    h2 = (
        jnp.dot(h1.astype(w2_ref.dtype), w2_ref[...],
                preferred_element_type=jnp.float32)
        + b2_ref[...]
    )
    h2 = jnp.maximum(h2, 0.0)

    # layer3 (no activation); output stays out_dim-wide, stored in out dtype.
    out = (
        jnp.dot(h2.astype(w3_ref.dtype), w3_ref[...],
                preferred_element_type=jnp.float32)
        + b3_ref[...]
    )
    out_ref[...] = out.astype(out_ref.dtype)


@functools.partial(
    jax.jit, static_argnames=("tile_b", "compute_dtype", "out_dtype")
)
def low_level_policy_forward(
    obs, params, *, tile_b=1024, compute_dtype=jnp.bfloat16, out_dtype=jnp.bfloat16
):
    """obs: (batch, in_dim) float32. params: dict of w1,b1,w2,b2,w3,b3.

    Weights are (in_features, out_features); biases are (1, out_features).
    """
    w1, b1 = params["w1"], params["b1"]
    w2, b2 = params["w2"], params["b2"]
    w3, b3 = params["w3"], params["b3"]

    batch, in_dim = obs.shape
    hidden = w1.shape[1]
    out_dim = w3.shape[1]

    # --- batch padding: only to a multiple of 8 (sublane), never tile_b ---
    batch_pad = _round_up(batch, 8)
    obs_p = obs if batch_pad == batch else jnp.pad(
        obs, ((0, batch_pad - batch), (0, 0))
    )

    # --- tile selection ---
    # Big tiles amortize the ~0.35us/step overhead; clamp for small batches.
    tile_b = max(8, min(tile_b, batch_pad))
    # If the whole batch would fit in <=2 tiles, halve the tile so there are
    # >=2 grid steps and megacore (v7x) can shard the "parallel" batch axis.
    if batch_pad > 8 and batch_pad <= 2 * tile_b:
        tile_b = min(tile_b, _round_up(pl.cdiv(batch_pad, 2), 8))
    grid = (pl.cdiv(batch_pad, tile_b),)  # last block may be ragged (masked)

    # Weights in the MXU compute dtype (tiny one-time cast); biases stay f32.
    w1c = w1.astype(compute_dtype)
    w2c = w2.astype(compute_dtype)
    w3c = w3.astype(compute_dtype)
    b1f = b1.astype(jnp.float32)
    b2f = b2.astype(jnp.float32)
    b3f = b3.astype(jnp.float32)

    # Constant index_map -> weights/biases VMEM-resident across all grid steps.
    const2d = lambda shape: pl.BlockSpec(shape, lambda i: (0, 0))

    out = pl.pallas_call(
        mlp_kernel,
        out_shape=jax.ShapeDtypeStruct((batch_pad, out_dim), out_dtype),
        grid_spec=pltpu.PrefetchScalarGridSpec(
            num_scalar_prefetch=0,
            grid=grid,
            in_specs=[
                pl.BlockSpec((tile_b, in_dim), lambda i: (i, 0)),  # obs: tiled f32
                const2d((in_dim, hidden)),                          # w1 resident
                const2d((1, hidden)),                               # b1 resident
                const2d((hidden, hidden)),                          # w2 resident
                const2d((1, hidden)),                               # b2 resident
                const2d((hidden, out_dim)),                         # w3 resident
                const2d((1, out_dim)),                              # b3 resident
            ],
            out_specs=pl.BlockSpec((tile_b, out_dim), lambda i: (i, 0)),
        ),
        compiler_params=pltpu.CompilerParams(
            # Batch axis is embarrassingly parallel -> megacore sharding on v7x.
            dimension_semantics=("parallel",),
        ),
    )(obs_p, w1c, b1f, w2c, b2f, w3c, b3f)

    # Strip the (at most 7 rows of) sublane batch padding.
    return out if batch_pad == batch else out[:batch]


def init_params(key, in_dim, out_dim, hidden=HIDDEN):
    """Deterministic synthetic init (Kaiming-uniform-ish like nn.Linear)."""
    ks = jax.random.split(key, 6)

    def linear(kw, kb, fan_in, fan_out):
        bound = 1.0 / jnp.sqrt(jnp.float32(fan_in))
        w = jax.random.uniform(kw, (fan_in, fan_out), jnp.float32, -bound, bound)
        b = jax.random.uniform(kb, (1, fan_out), jnp.float32, -bound, bound)
        return w, b

    w1, b1 = linear(ks[0], ks[1], in_dim, hidden)
    w2, b2 = linear(ks[2], ks[3], hidden, hidden)
    w3, b3 = linear(ks[4], ks[5], hidden, out_dim)
    return {"w1": w1, "b1": b1, "w2": w2, "b2": b2, "w3": w3, "b3": b3}


def reference_forward(obs, p, compute_dtype=jnp.bfloat16):
    """Plain-JAX reference using the same bf16-input / f32-accumulate recipe."""
    x = obs.astype(compute_dtype)
    h1 = jnp.dot(x, p["w1"].astype(compute_dtype),
                 preferred_element_type=jnp.float32) + p["b1"]
    h1 = jnp.maximum(h1, 0.0)
    h2 = jnp.dot(h1.astype(compute_dtype), p["w2"].astype(compute_dtype),
                 preferred_element_type=jnp.float32) + p["b2"]
    h2 = jnp.maximum(h2, 0.0)
    return jnp.dot(h2.astype(compute_dtype), p["w3"].astype(compute_dtype),
                   preferred_element_type=jnp.float32) + p["b3"]


if __name__ == "__main__":
    key = jax.random.PRNGKey(0)
    k_obs, k_obs2, k_params = jax.random.split(key, 3)

    in_dim, out_dim = 32, 16
    params = init_params(k_params, in_dim, out_dim)

    # --- small demo batch (single grid step) ---
    batch = 8
    obs = jax.random.normal(k_obs, (batch, in_dim), dtype=jnp.float32)
    out = low_level_policy_forward(obs, params)
    out = jax.block_until_ready(out)
    assert out.shape == (batch, out_dim)

    ref_bf16 = reference_forward(obs, params, jnp.bfloat16)
    assert jnp.allclose(out.astype(jnp.float32), ref_bf16, atol=2e-2, rtol=2e-2)
    ref_f32 = reference_forward(obs, params, jnp.float32)
    assert jnp.allclose(out.astype(jnp.float32), ref_f32, atol=5e-2, rtol=5e-2)

    # --- multi-step grid with a ragged last block (exercises cdiv path) ---
    batch2 = 200
    obs2 = jax.random.normal(k_obs2, (batch2, in_dim), dtype=jnp.float32)
    out2 = low_level_policy_forward(obs2, params, tile_b=64)
    out2 = jax.block_until_ready(out2)
    assert out2.shape == (batch2, out_dim)

    ref2 = reference_forward(obs2, params, jnp.bfloat16)
    assert jnp.allclose(out2.astype(jnp.float32), ref2, atol=2e-2, rtol=2e-2)

    print("KERNEL_OK")
</pallas_src>

<mosaic_0001>
module attributes {stable_mosaic.version = 11 : i64} {
  func.func @mlp_kernel(%arg0: i32, %arg1: memref<8x32xf32, #tpu.memory_space<vmem>>, %arg2: memref<32x64xbf16, #tpu.memory_space<vmem>>, %arg3: memref<1x64xf32, #tpu.memory_space<vmem>>, %arg4: memref<64x64xbf16, #tpu.memory_space<vmem>>, %arg5: memref<1x64xf32, #tpu.memory_space<vmem>>, %arg6: memref<64x16xbf16, #tpu.memory_space<vmem>>, %arg7: memref<1x16xf32, #tpu.memory_space<vmem>>, %arg8: memref<8x16xbf16, #tpu.memory_space<vmem>>) attributes {dimension_semantics = [#tpu.dimension_semantics<parallel>], iteration_bounds = array<i64: 1>, scalar_prefetch = 0 : i64, scratch_operands = 0 : i64, tpu.core_type = #tpu.core_type<tc>, window_params = [{transform_indices = @transform_0, window_bounds = array<i64: 8, 32>}, {pipeline_mode = #tpu.pipeline_mode<synchronous>, transform_indices = @transform_1, window_bounds = array<i64: 32, 64>}, {pipeline_mode = #tpu.pipeline_mode<synchronous>, transform_indices = @transform_2, window_bounds = array<i64: 1, 64>}, {pipeline_mode = #tpu.pipeline_mode<synchronous>, transform_indices = @transform_3, window_bounds = array<i64: 64, 64>}, {pipeline_mode = #tpu.pipeline_mode<synchronous>, transform_indices = @transform_4, window_bounds = array<i64: 1, 64>}, {pipeline_mode = #tpu.pipeline_mode<synchronous>, transform_indices = @transform_5, window_bounds = array<i64: 64, 16>}, {pipeline_mode = #tpu.pipeline_mode<synchronous>, transform_indices = @transform_6, window_bounds = array<i64: 1, 16>}, {transform_indices = @transform_7, window_bounds = array<i64: 8, 16>}]} {
    %c0 = arith.constant 0 : index
    %c0_0 = arith.constant 0 : index
    %0 = vector.load %arg1[%c0, %c0_0] : memref<8x32xf32, #tpu.memory_space<vmem>>, vector<8x32xf32>
    %1 = arith.truncf %0 : vector<8x32xf32> to vector<8x32xbf16>
    %c0_1 = arith.constant 0 : index
    %c0_2 = arith.constant 0 : index
    %2 = vector.load %arg2[%c0_1, %c0_2] : memref<32x64xbf16, #tpu.memory_space<vmem>>, vector<32x64xbf16>
    %cst = arith.constant dense<0.000000e+00> : vector<8x64xf32>
    %3 = tpu.matmul %1, %2, %cst {dimension_numbers = #tpu.dot_dimension_numbers<[1], [0], [0], [1], [0, 0, 1, 1], [], []>} : vector<8x32xbf16>, vector<32x64xbf16>, vector<8x64xf32> -> vector<8x64xf32>
    %c0_3 = arith.constant 0 : index
    %c0_4 = arith.constant 0 : index
    %4 = vector.load %arg3[%c0_3, %c0_4] : memref<1x64xf32, #tpu.memory_space<vmem>>, vector<1x64xf32>
    %5 = vector.broadcast %4 : vector<1x64xf32> to vector<8x64xf32>
    %6 = arith.addf %3, %5 : vector<8x64xf32>
    %cst_5 = arith.constant 0.000000e+00 : f32
    %7 = vector.broadcast %cst_5 : f32 to vector<8x64xf32>
    %8 = arith.maximumf %6, %7 : vector<8x64xf32>
    %9 = arith.truncf %8 : vector<8x64xf32> to vector<8x64xbf16>
    %c0_6 = arith.constant 0 : index
    %c0_7 = arith.constant 0 : index
    %10 = vector.load %arg4[%c0_6, %c0_7] : memref<64x64xbf16, #tpu.memory_space<vmem>>, vector<64x64xbf16>
    %cst_8 = arith.constant dense<0.000000e+00> : vector<8x64xf32>
    %11 = tpu.matmul %9, %10, %cst_8 {dimension_numbers = #tpu.dot_dimension_numbers<[1], [0], [0], [1], [0, 0, 1, 1], [], []>} : vector<8x64xbf16>, vector<64x64xbf16>, vector<8x64xf32> -> vector<8x64xf32>
    %c0_9 = arith.constant 0 : index
    %c0_10 = arith.constant 0 : index
    %12 = vector.load %arg5[%c0_9, %c0_10] : memref<1x64xf32, #tpu.memory_space<vmem>>, vector<1x64xf32>
    %13 = vector.broadcast %12 : vector<1x64xf32> to vector<8x64xf32>
    %14 = arith.addf %11, %13 : vector<8x64xf32>
    %cst_11 = arith.constant 0.000000e+00 : f32
    %15 = vector.broadcast %cst_11 : f32 to vector<8x64xf32>
    %16 = arith.maximumf %14, %15 : vector<8x64xf32>
    %17 = arith.truncf %16 : vector<8x64xf32> to vector<8x64xbf16>
    %c0_12 = arith.constant 0 : index
    %c0_13 = arith.constant 0 : index
    %18 = vector.load %arg6[%c0_12, %c0_13] : memref<64x16xbf16, #tpu.memory_space<vmem>>, vector<64x16xbf16>
    %cst_14 = arith.constant dense<0.000000e+00> : vector<8x16xf32>
    %19 = tpu.matmul %17, %18, %cst_14 {dimension_numbers = #tpu.dot_dimension_numbers<[1], [0], [0], [1], [0, 0, 1, 1], [], []>} : vector<8x64xbf16>, vector<64x16xbf16>, vector<8x16xf32> -> vector<8x16xf32>
    %c0_15 = arith.constant 0 : index
    %c0_16 = arith.constant 0 : index
    %20 = vector.load %arg7[%c0_15, %c0_16] : memref<1x16xf32, #tpu.memory_space<vmem>>, vector<1x16xf32>
    %21 = vector.broadcast %20 : vector<1x16xf32> to vector<8x16xf32>
    %22 = arith.addf %19, %21 : vector<8x16xf32>
    %23 = arith.truncf %22 : vector<8x16xf32> to vector<8x16xbf16>
    %c0_17 = arith.constant 0 : index
    %c0_18 = arith.constant 0 : index
    %24 = vector.load %arg8[%c0_17, %c0_18] : memref<8x16xbf16, #tpu.memory_space<vmem>>, vector<8x16xbf16>
    tpu.vector_store %arg8[%c0_17, %c0_18], %23 {strides = array<i32>} : memref<8x16xbf16, #tpu.memory_space<vmem>>, vector<8x16xbf16>,
    return
  }
  func.func @transform_0(%arg0: i32) -> (i32, i32) {
    %c0_i32 = arith.constant 0 : i32
    %c0_i32_0 = arith.constant 0 : i32
    return %arg0, %c0_i32 : i32, i32
  }
  func.func @transform_1(%arg0: i32) -> (i32, i32) {
    %c0_i32 = arith.constant 0 : i32
    %c0_i32_0 = arith.constant 0 : i32
    %c0_i32_1 = arith.constant 0 : i32
    return %c0_i32, %c0_i32_0 : i32, i32
  }
  func.func @transform_2(%arg0: i32) -> (i32, i32) {
    %c0_i32 = arith.constant 0 : i32
    %c0_i32_0 = arith.constant 0 : i32
    %c0_i32_1 = arith.constant 0 : i32
    return %c0_i32, %c0_i32_0 : i32, i32
  }
  func.func @transform_3(%arg0: i32) -> (i32, i32) {
    %c0_i32 = arith.constant 0 : i32
    %c0_i32_0 = arith.constant 0 : i32
    %c0_i32_1 = arith.constant 0 : i32
    return %c0_i32, %c0_i32_0 : i32, i32
  }
  func.func @transform_4(%arg0: i32) -> (i32, i32) {
    %c0_i32 = arith.constant 0 : i32
    %c0_i32_0 = arith.constant 0 : i32
    %c0_i32_1 = arith.constant 0 : i32
    return %c0_i32, %c0_i32_0 : i32, i32
  }
  func.func @transform_5(%arg0: i32) -> (i32, i32) {
    %c0_i32 = arith.constant 0 : i32
    %c0_i32_0 = arith.constant 0 : i32
    %c0_i32_1 = arith.constant 0 : i32
    return %c0_i32, %c0_i32_0 : i32, i32
  }
  func.func @transform_6(%arg0: i32) -> (i32, i32) {
    %c0_i32 = arith.constant 0 : i32
    %c0_i32_0 = arith.constant 0 : i32
    %c0_i32_1 = arith.constant 0 : i32
    return %c0_i32, %c0_i32_0 : i32, i32
  }
  func.func @transform_7(%arg0: i32) -> (i32, i32) {
    %c0_i32 = arith.constant 0 : i32
    %c0_i32_0 = arith.constant 0 : i32
    return %arg0, %c0_i32 : i32, i32
  }
}

</mosaic_0001>

<bundles_post_ra>
// kernel: low_level_policy_forward.1
= control target key start
LH: loop header
LB: loop body
LE: loop exit
PB: predicated region body
PF: predicated region fallthrough
CT: control target
= control target key end

     0   :  { %v381_v1 = vmov 0.0   ;;  %vm382_vm0 = vmmov 0   ;;  %vm53_vm1 = vcmask 261120   ;;  %s483_s0 = inlined_call_operand.vmem [shape: f32[8,32], index: 0, kind: input, shape index: {}]   ;;  %s484_s1 = inlined_call_operand.vmem [shape: bf16[32,64], index: 1, kind: input, shape index: {}]   ;;  %s485_s2 = inlined_call_operand.vmem [shape: f32[1,64], index: 2, kind: input, shape index: {}]   ;;  %s486_s3 = inlined_call_operand.vmem [shape: bf16[64,64], index: 3, kind: input, shape index: {}]   ;;  %s487_s4 = inlined_call_operand.vmem [shape: f32[1,64], index: 4, kind: input, shape index: {}]   ;;  %s488_s5 = inlined_call_operand.vmem [shape: bf16[64,16], index: 5, kind: input, shape index: {}]   ;;  %s489_s6 = inlined_call_operand.vmem [shape: f32[1,16], index: 6, kind: input, shape index: {}]   ;;  %s490_s7 = inlined_call_operand.hbm [shape: bf16[8,16], index: 7, kind: output, shape index: {}]  }
   0x1   :  { %v347_v0 = vld [vmem:[%s484_s1] sm:$0xff]   ;;  %312 = vmatprep.subr.bf16.mxu0 %v381_v1  ;;  %v348_v2 = vld [vmem:[%s484_s1 + $0x8] sm:$0xff]   ;;  %320 = vmatprep.subr.bf16.mxu1 %v381_v1 }
   0x2   :  { %313 = vmatpush3.bf16.msra.mxu0 %v347_v0  ;;  %316 = vmatprep.mubr.msk.bf16.mxu0 %vm382_vm0, %v381_v1  ;;  %v28_v3 = vld [vmem:[%s483_s0] sm:$0xff]  ;;  %v350_v5 = vld [vmem:[%s486_s3 + $0x8] sm:$0xff]  }
   0x3   :  { %314 = vmatprep.subr.bf16.mxu0 %v381_v1  ;;  %v349_v4 = vld [vmem:[%s486_s3] sm:$0xff]   ;;  %328 = vmatprep.mubr.msk.bf16.mxu1 %vm382_vm0, %v381_v1  ;;  %v29_v6 = vpack.c.bf16 %v28_v3, %v28_v3 }
   0x4   :  { %321 = vmatpush3.bf16.msra.mxu1 %v349_v4 }
   0x5   :  { %322 = vmatprep.subr.bf16.mxu1 %v381_v1 }
   0x6   :  { %315 = vmatpush3.bf16.msra.mxu0 %v348_v2 }
   0x7   :  { %332 = vmatprep.subr.bf16.mxu0 %v381_v1 }
   0x8   :  { %12 = vsyncpa [#allocation3], 0  ;;  %323 = vmatpush3.bf16.msra.mxu1 %v350_v5  ;;  %v351_v7 = vld [vmem:[%s486_s3 + $0x10] sm:$0xff]   ;;  %v352_v8 = vld [vmem:[%s486_s3 + $0x18] sm:$0xff]   ;;  %vm138_vm2 = vcmask 523264   ;;  %vm267_vm3 = vcmask 125952  }
   0x9   :  { %317 = vmatmul.mubr.msk.bf16.vlgmr.msra.gmra.mrb[0].mxu0 %vm53_vm1, %v29_v6  ;;  %324 = vmatprep.subr.bf16.mxu1 %v381_v1  ;;  %v353_v9 = vld [vmem:[%s488_s5] sm:$0xff]   ;;  %v354_v10 = vld [vmem:[%s488_s5 + $0x8] sm:$0xff]   ;;  %v355_v19 = vld [vmem:[%s488_s5 + $0x10] sm:$0xff]  }
   0xa   :  { %340 = vmatprep.mubr.msk.bf16.mxu0 %vm382_vm0, %v381_v1  ;;  %333 = vmatpush3.bf16.msra.mxu0 %v353_v9  ;;  %v283_v11 = vld [vmem:[%s485_s2] ss:$0 sm:$0xff]  ;;  %v356_v20 = vld [vmem:[%s488_s5 + $0x18] sm:$0xff]   ;;  %s383_s5 = smov [#allocation2]  }
   0xb   :  { %334 = vmatprep.subr.bf16.mxu0 %v381_v1  ;;  %v287_v21 = vld [vmem:[%s487_s4] ss:$0 sm:$0xff]  ;;  %s275_s25 = sshll.u32 %s383_s5, 4  ;;  %s276_s25 = int_to_ptr.vmem [resolvable:$true] %s275_s25 }
   0xc   :  { %325 = vmatpush3.bf16.msra.mxu1 %v351_v7  ;;  %v293_v29 = vld [vmem:[%s489_s6] ss:$0 sm:$0xff]  ;;  %s357_s4 = scalar_lea.vmem %s276_s25, 64  ;;  %p362_p1 = scmp.lt.s32.totalorder %s276_s25, %s276_s25 }
   0xd   :  { %326 = vmatprep.subr.bf16.mxu1 %v381_v1  ;;  %p358_p0 = scmp.ne.s32.totalorder %s276_s25, %s357_s4  ;;  %p363_p2 = scmp.lt.s32.totalorder %s357_s4, %s357_s4 }
   0xe   :  { %335 = vmatpush3.bf16.msra.mxu0 %v354_v10 }
   0xf   :  { %336 = vmatprep.subr.bf16.mxu0 %v381_v1  ;;  %p364_p3 = por %p363_p2, %p362_p1 }
  0x10   :  { %327 = vmatpush3.bf16.msra.mxu1 %v352_v8 }
  0x11   :  { %p365_p4 = pnand %p364_p3, %p358_p0 }
  0x12   :  { %337 = vmatpush3.bf16.msra.mxu0 %v355_v19 }
  0x13   :  { %338 = vmatprep.subr.bf16.mxu0 %v381_v1 }
  0x16   :  { %339 = vmatpush3.bf16.msra.mxu0 %v356_v20 }
  0xdc   :  { %v91_v12 = vpop.f32.mrb[0].mxu0 }
  0xdd   :  { %v92_v13 = vadd.f32 %v283_v11, %v91_v12  ;;  %v318_v14 = vpop.f32.mrb[1].mxu0 }
  0xde   :  { %v94_v15 = vpop.f32.mrb[2].mxu0 }
  0xdf   :  { %v97_v16 = vmax.f32 %v92_v13, 0.0  ;;  %v319_v17 = vpop.f32.mrb[3].mxu0 }
  0xe1   :  { %v98_v18 = vpack.c.bf16 %v97_v16, %v97_v16 }
  0xe3   :  { %329 = vmatmul.mubr.msk.bf16.vlgmr.msra.gmra.mrb[0].mxu1 %vm138_vm2, %v98_v18 }
 0x1b6   :  { %v176_v22 = vpop.f32.mrb[0].mxu1 }
 0x1b7   :  { %v177_v23 = vadd.f32 %v287_v21, %v176_v22  ;;  %v330_v24 = vpop.f32.mrb[1].mxu1 }
 0x1b8   :  { %v179_v25 = vpop.f32.mrb[2].mxu1 }
 0x1b9   :  { %v182_v26 = vmax.f32 %v177_v23, 0.0  ;;  %v331_v27 = vpop.f32.mrb[3].mxu1 }
 0x1bb   :  { %v183_v28 = vpack.c.bf16 %v182_v26, %v182_v26 }
 0x1bd   :  { %341 = vmatmul.mubr.msk.bf16.vlgmr.msra.gmra.mrb[4].mxu0 %vm138_vm2, %v183_v28 }
 0x290   :  { %v260_v30 = vpop.f32.mrb[4].mxu0 }
 0x291   :  { %v261_v31 = vadd.f32 %v293_v29, %v260_v30  ;;  %v342_v32 = vpop.f32.mrb[5].mxu0 }
 0x292   :  { %v263_v33 = vpop.f32.mrb[6].mxu0 }
 0x293   :  { %v266_v34 = vpack.c.bf16 %v261_v31, %v261_v31  ;;  %v343_v35 = vpop.f32.mrb[7].mxu0 }
 0x295   :  { %268 = vst.msk [vmem:[#allocation2] sm:$0xf] %vm267_vm3, %v266_v34 }
 0x296   :  { %368 = shalt.err (!%p365_p4)
}
 0x297   :  { %s369_s27 = scalar_lea.hbm %s490_s7, 64 }
 0x298   :  { %p370_p5 = scmp.ne.s32.totalorder %s490_s7, %s369_s27  ;;  %p373_p6 = scmp.lt.u32.totalorder %s369_s27, %s490_s7 }
 0x29a   :  { %p375_p7 = pnand %p373_p6, %p370_p5 }
 0x29c   :  { %378 = shalt.err (!%p375_p7)
}
 0x29d   :  { %278 = dma.vmem_to_hbm [thread:$0]  %s276_s25, 64, %s490_s7, [#allocation3]  }
 0x29e   :  { %379 = dma.done.wait [#allocation3], 64  }
 0x29f   :  { %380 = vsyncadd [#allocation3], 4294967232 }
 0x2a0   :  { %282 = vsyncpa [#allocation3], 1 }

</bundles_post_ra>
